<compile_context>
chip_gen: v6e
topology: v6e:2x2x1
jax: 0.10.0
libtpu: 0.0.40
codegen_flags: <defaults>
</compile_context>

<pallas_src>
import numpy as np
import jax
import jax.numpy as jnp
from jax.experimental import pallas as pl
from jax.experimental.pallas import tpu as pltpu

LANE = 128


# -----------------------------------------------------------------------------
# helpers
# -----------------------------------------------------------------------------
def _round_up(n, m):
    return -(-n // m) * m


def _row_tiling(n, *, single_block_max=512, max_tile=1024):
    """Rows padded to a multiple of 16 (bf16 sublane packing).  Up to
    `single_block_max` rows use a single block (grid=1): v5e/v6e have one
    TensorCore, so extra grid steps are serial overhead (~0.35us each).  Larger
    N splits into >=2 'parallel' blocks (v7x megacore) capped at `max_tile`
    rows; even a 1024x128 f32 block is only 512 KiB, far below any VMEM limit."""
    n16 = _round_up(max(n, 16), 16)
    if n16 <= single_block_max:
        return n16, n16
    tile = min(max_tile, _round_up(-(-n16 // 2), 16))
    return _round_up(n16, tile), tile


def _pad2d(x, rows, cols, dtype=None):
    out = jnp.pad(x, ((0, rows - x.shape[0]), (0, cols - x.shape[1])))
    return out.astype(dtype) if dtype is not None else out


# -----------------------------------------------------------------------------
# Pallas kernels
# -----------------------------------------------------------------------------
def _context_kernel(x_ref, wci_ref, bci_ref, woe_ref, boe_ref,
                    wpe_ref, bpe_ref, o_ref):
    """Fused context path (one row tile per grid step):
        ctx      = relu(roi @ W_ctx_in + b)
        oe       = ctx @ [W_obj_cls | W_edge] + b        (single N=256 matmul)
        edge_rep = oe[:,128:] @ W_post_emb + b           (head [0:H), tail [hf:hf+H))
        out      = edge_rep + obj logits packed at free lanes [obj_off:obj_off+O)
    Matmul operands bf16 (pre-cast), accumulation / bias math f32."""
    ctx = jnp.dot(x_ref[...], wci_ref[...],
                  preferred_element_type=jnp.float32) + bci_ref[...]
    ctx = jnp.maximum(ctx, 0.0).astype(jnp.bfloat16)
    oe = jnp.dot(ctx, woe_ref[...],
                 preferred_element_type=jnp.float32) + boe_ref[...]
    hp = wpe_ref.shape[0]
    obj = oe[:, :hp]                            # nonzero only at obj lanes
    edge = oe[:, hp:].astype(jnp.bfloat16)      # edge_ctx at lanes [0:H)
    rep = jnp.dot(edge, wpe_ref[...],
                  preferred_element_type=jnp.float32) + bpe_ref[...]
    # rep is exactly zero at the obj lanes -> plain add packs both into one block
    o_ref[...] = (rep + obj).astype(o_ref.dtype)


def context_fused(roi_pad, p, *, tile):
    n_pad, Cp = roi_pad.shape
    Hp = p["w_ctx_in"].shape[1]
    OEp = p["w_obj_edge"].shape[1]
    H2p = p["w_post_emb"].shape[1]
    grid = n_pad // tile
    return pl.pallas_call(
        _context_kernel,
        out_shape=jax.ShapeDtypeStruct((n_pad, H2p), jnp.float32),
        grid_spec=pltpu.PrefetchScalarGridSpec(
            num_scalar_prefetch=0,
            grid=(grid,),
            in_specs=[
                pl.BlockSpec((tile, Cp), lambda i: (i, 0)),   # roi features (bf16)
                pl.BlockSpec((Cp, Hp), lambda i: (0, 0)),     # W_ctx_in
                pl.BlockSpec((1, Hp), lambda i: (0, 0)),      # b_ctx_in
                pl.BlockSpec((Hp, OEp), lambda i: (0, 0)),    # [W_obj_cls | W_edge]
                pl.BlockSpec((1, OEp), lambda i: (0, 0)),     # merged bias
                pl.BlockSpec((Hp, H2p), lambda i: (0, 0)),    # W_post_emb
                pl.BlockSpec((1, H2p), lambda i: (0, 0)),     # b_post_emb
            ],
            out_specs=pl.BlockSpec((tile, H2p), lambda i: (i, 0)),
        ),
        compiler_params=pltpu.CompilerParams(dimension_semantics=("parallel",)),
    )(roi_pad, p["w_ctx_in"], p["b_ctx_in"], p["w_obj_edge"], p["b_obj_edge"],
      p["w_post_emb"], p["b_post_emb"])


def _rel_kernel(prod_ref, union_ref, idx_ref,
                wcat_ref, bcat_ref, wup_ref, bup_ref,
                wout_ref, bout_ref, ftbl_ref, o_ref):
    """Fused relation hot path (one row tile per grid step):
        ctx_gate = prod_rep @ W_post_cat + b
        up       = union    @ W_up_dim   + b        (union_single_not_match=True)
        visual   = ctx_gate * up
        rel      = [visual | prod_rep] @ [W_rel ; W_ctx] + (b_rel+b_ctx)   (K=256)
                   + onehot(pair_label_idx) @ freq_table    (fused freq-bias gather)
    """
    prod = prod_ref[...]
    ctx_gate = jnp.dot(prod, wcat_ref[...],
                       preferred_element_type=jnp.float32) + bcat_ref[...]
    up = jnp.dot(union_ref[...], wup_ref[...],
                 preferred_element_type=jnp.float32) + bup_ref[...]
    visual = (ctx_gate * up).astype(jnp.bfloat16)
    lhs = jnp.concatenate((visual, prod), axis=-1)            # (tile, 256) bf16
    out = jnp.dot(lhs, wout_ref[...],
                  preferred_element_type=jnp.float32) + bout_ref[...]
    # in-kernel frequency-bias lookup: one-hot over the resident table replaces
    # an [n_rel,128] f32 HBM gather round trip in the wrapper.
    rows = prod_ref.shape[0]
    oo = ftbl_ref.shape[0]
    onehot = (jax.lax.broadcasted_iota(jnp.int32, (rows, oo), 1)
              == idx_ref[...]).astype(jnp.bfloat16)
    out = out + jnp.dot(onehot, ftbl_ref[...], preferred_element_type=jnp.float32)
    o_ref[...] = out.astype(o_ref.dtype)


def rel_fused(prod_pad, union_pad, idx_pad, p, *, tile):
    n_pad, H2p = prod_pad.shape
    Mhp = union_pad.shape[1]
    Pp = p["w_post_cat"].shape[1]
    Kout, Rp = p["w_rel_out"].shape
    OOp = p["freq_bias_table"].shape[0]
    grid = n_pad // tile
    return pl.pallas_call(
        _rel_kernel,
        out_shape=jax.ShapeDtypeStruct((n_pad, Rp), jnp.float32),
        grid_spec=pltpu.PrefetchScalarGridSpec(
            num_scalar_prefetch=0,
            grid=(grid,),
            in_specs=[
                pl.BlockSpec((tile, H2p), lambda i: (i, 0)),   # prod_rep (bf16)
                pl.BlockSpec((tile, Mhp), lambda i: (i, 0)),   # union feats (bf16)
                pl.BlockSpec((tile, 1), lambda i: (i, 0)),     # freq-bias flat idx (int32)
                pl.BlockSpec((H2p, Pp), lambda i: (0, 0)),     # W_post_cat
                pl.BlockSpec((1, Pp), lambda i: (0, 0)),       # b_post_cat
                pl.BlockSpec((Mhp, Pp), lambda i: (0, 0)),     # W_up_dim
                pl.BlockSpec((1, Pp), lambda i: (0, 0)),       # b_up_dim
                pl.BlockSpec((Kout, Rp), lambda i: (0, 0)),    # [W_rel ; W_ctx]
                pl.BlockSpec((1, Rp), lambda i: (0, 0)),       # b_rel + b_ctx
                pl.BlockSpec((OOp, Rp), lambda i: (0, 0)),     # freq-bias table (bf16)
            ],
            out_specs=pl.BlockSpec((tile, Rp), lambda i: (i, 0)),
        ),
        compiler_params=pltpu.CompilerParams(dimension_semantics=("parallel",)),
    )(prod_pad, union_pad, idx_pad,
      p["w_post_cat"], p["b_post_cat"], p["w_up_dim"], p["b_up_dim"],
      p["w_rel_out"], p["b_rel_ctx"], p["freq_bias_table"])


# -----------------------------------------------------------------------------
# TransformerPredictor (JAX / Pallas)
# -----------------------------------------------------------------------------
class TransformerPredictorPallas:
    """Synthetic-weight reimplementation of TransformerPredictor.forward.

    Config: in_channels=64, hidden_dim=32, pooling_dim=64, MLP_HEAD_DIM=48,
    num_obj_cls=16, num_rel_cls=24, use_vision=True, use_bias=True,
    attribute_on=False, pooling_dim != MLP_HEAD_DIM -> union_single_not_match.
    """

    def __init__(self, key, *, in_channels=64, hidden_dim=32, pooling_dim=64,
                 mlp_head_dim=48, num_obj_cls=16, num_rel_cls=24):
        self.in_channels = in_channels
        self.hidden_dim = hidden_dim
        self.pooling_dim = pooling_dim
        self.mlp_head_dim = mlp_head_dim
        self.num_obj_cls = num_obj_cls
        self.num_rel_cls = num_rel_cls

        ks = list(jax.random.split(key, 16))

        def xavier(k, shape):
            fan_in, fan_out = shape
            lim = (6.0 / (fan_in + fan_out)) ** 0.5
            return jax.random.uniform(k, shape, jnp.float32, -lim, lim)

        def normal(k, shape, scale):
            return scale * jax.random.normal(k, shape, jnp.float32)

        H, H2, P, Mh = hidden_dim, 2 * hidden_dim, pooling_dim, mlp_head_dim
        C, R, O = in_channels, num_rel_cls, num_obj_cls

        # ---- logical (un-padded) weights; shapes match the PyTorch module ----
        # TODO(synk): TransformerContext (word embeddings + stacked self-attn
        # encoders) is replaced by a deterministic linear stand-in.
        w_ctx_in = xavier(ks[0], (C, H));   b_ctx_in = jnp.zeros((H,))
        w_obj_cls = xavier(ks[1], (H, O));  b_obj_cls = jnp.zeros((O,))
        w_edge = xavier(ks[2], (H, H));     b_edge = jnp.zeros((H,))
        w_post_emb = normal(ks[3], (H, H2), 10.0 * (1.0 / H) ** 0.5)
        b_post_emb = jnp.zeros((H2,))
        w_post_cat = xavier(ks[4], (H2, P));  b_post_cat = jnp.zeros((P,))
        w_up_dim = xavier(ks[5], (Mh, P));    b_up_dim = jnp.zeros((P,))
        w_rel = xavier(ks[6], (P, R));        b_rel = jnp.zeros((R,))
        w_ctx = xavier(ks[7], (H2, R));       b_ctx = jnp.zeros((R,))
        freq_tbl = 0.01 * jax.random.normal(ks[8], (O * O, R), jnp.float32)

        self.ref = dict(w_ctx_in=w_ctx_in, b_ctx_in=b_ctx_in,
                        w_obj_cls=w_obj_cls, b_obj_cls=b_obj_cls,
                        w_edge=w_edge, b_edge=b_edge,
                        w_post_emb=w_post_emb, b_post_emb=b_post_emb,
                        w_post_cat=w_post_cat, b_post_cat=b_post_cat,
                        w_up_dim=w_up_dim, b_up_dim=b_up_dim,
                        w_rel=w_rel, b_rel=b_rel, w_ctx=w_ctx, b_ctx=b_ctx,
                        freq_tbl=freq_tbl)

        # ---- lane-padded (128) layouts; matmul weights stored bf16 ----
        self.Cp = _round_up(C, LANE)
        self.Hp = LANE                 # internal context hidden (ctx / edge_ctx)
        self.H2p = LANE                # packed context output lanes
        self.half = self.H2p // 2
        self.Pp = _round_up(P, LANE)
        self.Mhp = _round_up(Mh, LANE)
        self.Rp = _round_up(R, LANE)
        self.OOp = _round_up(O * O, LANE)
        hf = self.half
        # obj logits are packed into the zero lanes after the tail features
        self.obj_off = hf + H
        assert 2 * H <= self.H2p and H <= hf and self.obj_off + O <= self.H2p, \
            "packed-output layout needs H <= 64 and obj_off + O <= 128"
        bf16 = jnp.bfloat16

        # merged [W_obj_cls | W_edge] : obj cols at [obj_off:obj_off+O) of the
        # first 128 lanes, edge cols at [128:128+H)
        woe = jnp.zeros((self.Hp, 2 * self.Hp), jnp.float32)
        woe = woe.at[:H, self.obj_off:self.obj_off + O].set(w_obj_cls)
        woe = woe.at[:H, self.Hp:self.Hp + H].set(w_edge)
        boe = jnp.zeros((2 * self.Hp,), jnp.float32)
        boe = boe.at[self.obj_off:self.obj_off + O].set(b_obj_cls)
        boe = boe.at[self.Hp:self.Hp + H].set(b_edge)

        # post_emb: head cols -> [0:H), tail cols -> [hf:hf+H); cols [obj_off:) stay 0
        w_pe = jnp.zeros((self.Hp, self.H2p), jnp.float32)
        w_pe = w_pe.at[:H, :H].set(w_post_emb[:, :H])
        w_pe = w_pe.at[:H, hf:hf + H].set(w_post_emb[:, H:])
        b_pe = jnp.zeros((self.H2p,), jnp.float32)
        b_pe = b_pe.at[:H].set(b_post_emb[:H]).at[hf:hf + H].set(b_post_emb[H:])

        def remap_rows(w, cols_pad):
            # original rows [0:H) = head inputs, [H:2H) = tail inputs
            out = jnp.zeros((self.H2p, cols_pad), jnp.float32)
            out = out.at[:H, :w.shape[1]].set(w[:H, :])
            out = out.at[hf:hf + H, :w.shape[1]].set(w[H:, :])
            return out

        # merged rel output weight: rows [0:Pp) = W_rel_compress (visual half),
        # rows [Pp:Pp+H2p) = W_ctx_compress (prod half, head/tail remapped)
        w_out = jnp.zeros((self.Pp + self.H2p, self.Rp), jnp.float32)
        w_out = w_out.at[:P, :R].set(w_rel)
        w_out = w_out.at[self.Pp:self.Pp + H, :R].set(w_ctx[:H, :])
        w_out = w_out.at[self.Pp + hf:self.Pp + hf + H, :R].set(w_ctx[H:, :])

        ftbl = jnp.zeros((self.OOp, self.Rp), jnp.float32)
        ftbl = ftbl.at[:O * O, :R].set(freq_tbl)

        self.params = {
            "w_ctx_in":  _pad2d(w_ctx_in, self.Cp, self.Hp, bf16),
            "b_ctx_in":  _pad2d(b_ctx_in[None, :], 1, self.Hp),
            "w_obj_edge": woe.astype(bf16),
            "b_obj_edge": boe[None, :],
            "w_post_emb": w_pe.astype(bf16),
            "b_post_emb": b_pe[None, :],
            "w_post_cat": remap_rows(w_post_cat, self.Pp).astype(bf16),
            "b_post_cat": _pad2d(b_post_cat[None, :], 1, self.Pp),
            "w_up_dim":   _pad2d(w_up_dim, self.Mhp, self.Pp, bf16),
            "b_up_dim":   _pad2d(b_up_dim[None, :], 1, self.Pp),
            "w_rel_out":  w_out.astype(bf16),
            "b_rel_ctx":  _pad2d((b_rel + b_ctx)[None, :], 1, self.Rp),
            "freq_bias_table": ftbl.astype(bf16),
        }

    # ------------------------------------------------------------------ forward
    def __call__(self, num_objs, rel_pair_idxs, roi_features, union_features):
        p = self.params
        O, R = self.num_obj_cls, self.num_rel_cls
        n_obj = int(roi_features.shape[0])
        num_rels = [int(r.shape[0]) for r in rel_pair_idxs]
        n_rel = int(union_features.shape[0])
        assert len(num_rels) == len(num_objs)
        assert sum(num_objs) == n_obj and sum(num_rels) == n_rel

        # ---------------- context path: one fused pallas_call ----------------
        n_obj_pad, obj_tile = _row_tiling(n_obj)
        roi_pad = _pad2d(roi_features, n_obj_pad, self.Cp, jnp.bfloat16)
        ctx_out = context_fused(roi_pad, p, tile=obj_tile)   # [n_obj_pad, 128] f32
        obj_dists = ctx_out[:n_obj, self.obj_off:self.obj_off + O]   # packed lanes
        obj_preds = jnp.argmax(obj_dists[:, 1:], axis=-1) + 1        # skip background

        # -------- single global pair gather (no per-image slice loop) --------
        offsets = np.cumsum([0] + list(num_objs))[:-1]
        glob_pairs = jnp.concatenate(
            [idx + int(off) for idx, off in zip(rel_pair_idxs, offsets)], axis=0)
        head_rep = ctx_out[:, :self.half]     # head feats at lanes [0:H)
        tail_rep = ctx_out[:, self.half:]     # tail feats at [0:H) of this slice
        prod_rep = jnp.concatenate(
            (jnp.take(head_rep, glob_pairs[:, 0], axis=0),
             jnp.take(tail_rep, glob_pairs[:, 1], axis=0)), axis=-1)  # [N_rel, 128]
        pair_pred = jnp.stack((jnp.take(obj_preds, glob_pairs[:, 0]),
                               jnp.take(obj_preds, glob_pairs[:, 1])), axis=1)
        flat_idx = (pair_pred[:, 0] * O + pair_pred[:, 1]).astype(jnp.int32)

        # ---------------- relation hot path: one fused pallas_call -----------
        n_rel_pad, rel_tile = _row_tiling(n_rel)
        prod_pad = _pad2d(prod_rep, n_rel_pad, self.H2p, jnp.bfloat16)
        union_pad = _pad2d(union_features, n_rel_pad, self.Mhp, jnp.bfloat16)
        idx_pad = jnp.pad(flat_idx, (0, n_rel_pad - n_rel))[:, None]  # [n_rel_pad,1]
        rel_dists_pad = rel_fused(prod_pad, union_pad, idx_pad, p, tile=rel_tile)
        rel_dists = rel_dists_pad[:n_rel, :R]                         # [N_rel, R]

        # ---------------- per-image splits (static host ints) ----------------
        obj_splits = jnp.split(obj_dists, np.cumsum(num_objs)[:-1].tolist())
        rel_splits = jnp.split(rel_dists, np.cumsum(num_rels)[:-1].tolist())
        add_losses = {}
        return obj_splits, rel_splits, add_losses


# -----------------------------------------------------------------------------
# pure-JAX f32 reference (same stand-in context), for numerical validation
# -----------------------------------------------------------------------------
def _reference_forward(model, num_objs, rel_pair_idxs, roi, union, obj_preds):
    r = model.ref
    H, O = model.hidden_dim, model.num_obj_cls
    ctx = jnp.maximum(roi @ r["w_ctx_in"] + r["b_ctx_in"], 0.0)
    obj_dists = ctx @ r["w_obj_cls"] + r["b_obj_cls"]
    edge_ctx = ctx @ r["w_edge"] + r["b_edge"]
    edge_rep = edge_ctx @ r["w_post_emb"] + r["b_post_emb"]
    head, tail = edge_rep[:, :H], edge_rep[:, H:]
    offsets = np.cumsum([0] + list(num_objs))[:-1]
    pairs = jnp.concatenate(
        [idx + int(off) for idx, off in zip(rel_pair_idxs, offsets)], axis=0)
    prod = jnp.concatenate((head[pairs[:, 0]], tail[pairs[:, 1]]), axis=-1)
    pair_pred = jnp.stack((obj_preds[pairs[:, 0]], obj_preds[pairs[:, 1]]), axis=1)
    ctx_gate = prod @ r["w_post_cat"] + r["b_post_cat"]
    up = union @ r["w_up_dim"] + r["b_up_dim"]
    visual = ctx_gate * up
    rel = visual @ r["w_rel"] + r["b_rel"] + prod @ r["w_ctx"] + r["b_ctx"]
    rel = rel + r["freq_tbl"][pair_pred[:, 0] * O + pair_pred[:, 1]]
    return obj_dists, rel


# -----------------------------------------------------------------------------
if __name__ == "__main__":
    key = jax.random.PRNGKey(0)
    k_param, k_roi, k_union, k_pairs = jax.random.split(key, 4)

    # two images, 8 proposals each, 8 relation pairs each
    num_objs = [8, 8]
    num_rels = [8, 8]
    N_obj = sum(num_objs)
    N_rel = sum(num_rels)

    model = TransformerPredictorPallas(k_param)

    roi_features = jax.random.normal(k_roi, (N_obj, model.in_channels), jnp.float32)
    union_features = jax.random.normal(k_union, (N_rel, model.mlp_head_dim),
                                       jnp.float32)
    pk = jax.random.split(k_pairs, len(num_rels))
    rel_pair_idxs = [
        jax.random.randint(pk[i], (num_rels[i], 2), 0, num_objs[i], jnp.int32)
        for i in range(len(num_rels))
    ]

    obj_splits, rel_splits, add_losses = model(
        num_objs, rel_pair_idxs, roi_features, union_features)
    for t in obj_splits + rel_splits:
        jax.block_until_ready(t)

    assert [t.shape for t in obj_splits] == [(8, model.num_obj_cls)] * 2
    assert [t.shape for t in rel_splits] == [(8, model.num_rel_cls)] * 2
    assert all(bool(jnp.all(jnp.isfinite(t))) for t in obj_splits + rel_splits)

    # numerical check vs an all-f32 reference (bf16 matmul operands -> loose tol);
    # reference reuses the kernel's obj_preds so the freq-bias rows match exactly.
    obj_dists = jnp.concatenate(obj_splits)
    rel_dists = jnp.concatenate(rel_splits)
    obj_preds = jnp.argmax(obj_dists[:, 1:], axis=-1) + 1
    ref_obj, ref_rel = _reference_forward(
        model, num_objs, rel_pair_idxs, roi_features, union_features, obj_preds)

    def _close(a, b, tol):
        a = np.asarray(a); b = np.asarray(b)
        return float(np.max(np.abs(a - b))) <= tol * (float(np.max(np.abs(b))) + 1e-6)

    assert _close(obj_dists, ref_obj, 0.05), "obj_dists mismatch vs f32 reference"
    assert _close(rel_dists, ref_rel, 0.05), "rel_dists mismatch vs f32 reference"

    print("KERNEL_OK")
</pallas_src>

<mosaic_0001>
module attributes {stable_mosaic.version = 11 : i64} {
  func.func @_context_kernel(%arg0: i32, %arg1: memref<16x128xbf16, #tpu.memory_space<vmem>>, %arg2: memref<128x128xbf16, #tpu.memory_space<vmem>>, %arg3: memref<1x128xf32, #tpu.memory_space<vmem>>, %arg4: memref<128x256xbf16, #tpu.memory_space<vmem>>, %arg5: memref<1x256xf32, #tpu.memory_space<vmem>>, %arg6: memref<128x128xbf16, #tpu.memory_space<vmem>>, %arg7: memref<1x128xf32, #tpu.memory_space<vmem>>, %arg8: memref<16x128xf32, #tpu.memory_space<vmem>>) attributes {dimension_semantics = [#tpu.dimension_semantics<parallel>], iteration_bounds = array<i64: 1>, scalar_prefetch = 0 : i64, scratch_operands = 0 : i64, tpu.core_type = #tpu.core_type<tc>, window_params = [{transform_indices = @transform_0, window_bounds = array<i64: 16, 128>}, {pipeline_mode = #tpu.pipeline_mode<synchronous>, transform_indices = @transform_1, window_bounds = array<i64: 128, 128>}, {pipeline_mode = #tpu.pipeline_mode<synchronous>, transform_indices = @transform_2, window_bounds = array<i64: 1, 128>}, {pipeline_mode = #tpu.pipeline_mode<synchronous>, transform_indices = @transform_3, window_bounds = array<i64: 128, 256>}, {pipeline_mode = #tpu.pipeline_mode<synchronous>, transform_indices = @transform_4, window_bounds = array<i64: 1, 256>}, {pipeline_mode = #tpu.pipeline_mode<synchronous>, transform_indices = @transform_5, window_bounds = array<i64: 128, 128>}, {pipeline_mode = #tpu.pipeline_mode<synchronous>, transform_indices = @transform_6, window_bounds = array<i64: 1, 128>}, {transform_indices = @transform_7, window_bounds = array<i64: 16, 128>}]} {
    %c0 = arith.constant 0 : index
    %c0_0 = arith.constant 0 : index
    %0 = vector.load %arg1[%c0, %c0_0] : memref<16x128xbf16, #tpu.memory_space<vmem>>, vector<16x128xbf16>
    %c0_1 = arith.constant 0 : index
    %c0_2 = arith.constant 0 : index
    %1 = vector.load %arg2[%c0_1, %c0_2] : memref<128x128xbf16, #tpu.memory_space<vmem>>, vector<128x128xbf16>
    %cst = arith.constant dense<0.000000e+00> : vector<16x128xf32>
    %2 = tpu.matmul %0, %1, %cst {dimension_numbers = #tpu.dot_dimension_numbers<[1], [0], [0], [1], [0, 0, 1, 1], [], []>} : vector<16x128xbf16>, vector<128x128xbf16>, vector<16x128xf32> -> vector<16x128xf32>
    %c0_3 = arith.constant 0 : index
    %c0_4 = arith.constant 0 : index
    %3 = vector.load %arg3[%c0_3, %c0_4] : memref<1x128xf32, #tpu.memory_space<vmem>>, vector<1x128xf32>
    %4 = vector.broadcast %3 : vector<1x128xf32> to vector<16x128xf32>
    %5 = arith.addf %2, %4 : vector<16x128xf32>
    %cst_5 = arith.constant 0.000000e+00 : f32
    %6 = vector.broadcast %cst_5 : f32 to vector<16x128xf32>
    %7 = arith.maximumf %5, %6 : vector<16x128xf32>
    %8 = arith.truncf %7 : vector<16x128xf32> to vector<16x128xbf16>
    %c0_6 = arith.constant 0 : index
    %c0_7 = arith.constant 0 : index
    %9 = vector.load %arg4[%c0_6, %c0_7] : memref<128x256xbf16, #tpu.memory_space<vmem>>, vector<128x256xbf16>
    %cst_8 = arith.constant dense<0.000000e+00> : vector<16x256xf32>
    %10 = tpu.matmul %8, %9, %cst_8 {dimension_numbers = #tpu.dot_dimension_numbers<[1], [0], [0], [1], [0, 0, 1, 1], [], []>} : vector<16x128xbf16>, vector<128x256xbf16>, vector<16x256xf32> -> vector<16x256xf32>
    %c0_9 = arith.constant 0 : index
    %c0_10 = arith.constant 0 : index
    %11 = vector.load %arg5[%c0_9, %c0_10] : memref<1x256xf32, #tpu.memory_space<vmem>>, vector<1x256xf32>
    %12 = vector.broadcast %11 : vector<1x256xf32> to vector<16x256xf32>
    %13 = arith.addf %10, %12 : vector<16x256xf32>
    %14 = vector.extract_strided_slice %13 {offsets = [0, 0], sizes = [16, 128], strides = [1, 1]} : vector<16x256xf32> to vector<16x128xf32>
    %15 = vector.extract_strided_slice %13 {offsets = [0, 128], sizes = [16, 128], strides = [1, 1]} : vector<16x256xf32> to vector<16x128xf32>
    %16 = arith.truncf %15 : vector<16x128xf32> to vector<16x128xbf16>
    %c0_11 = arith.constant 0 : index
    %c0_12 = arith.constant 0 : index
    %17 = vector.load %arg6[%c0_11, %c0_12] : memref<128x128xbf16, #tpu.memory_space<vmem>>, vector<128x128xbf16>
    %cst_13 = arith.constant dense<0.000000e+00> : vector<16x128xf32>
    %18 = tpu.matmul %16, %17, %cst_13 {dimension_numbers = #tpu.dot_dimension_numbers<[1], [0], [0], [1], [0, 0, 1, 1], [], []>} : vector<16x128xbf16>, vector<128x128xbf16>, vector<16x128xf32> -> vector<16x128xf32>
    %c0_14 = arith.constant 0 : index
    %c0_15 = arith.constant 0 : index
    %19 = vector.load %arg7[%c0_14, %c0_15] : memref<1x128xf32, #tpu.memory_space<vmem>>, vector<1x128xf32>
    %20 = vector.broadcast %19 : vector<1x128xf32> to vector<16x128xf32>
    %21 = arith.addf %18, %20 : vector<16x128xf32>
    %22 = arith.addf %21, %14 : vector<16x128xf32>
    %c0_16 = arith.constant 0 : index
    %c0_17 = arith.constant 0 : index
    %23 = vector.load %arg8[%c0_16, %c0_17] : memref<16x128xf32, #tpu.memory_space<vmem>>, vector<16x128xf32>
    tpu.vector_store %arg8[%c0_16, %c0_17], %22 {strides = array<i32>} : memref<16x128xf32, #tpu.memory_space<vmem>>, vector<16x128xf32>,
    return
  }
  func.func @transform_0(%arg0: i32) -> (i32, i32) {
    %c0_i32 = arith.constant 0 : i32
    %c0_i32_0 = arith.constant 0 : i32
    return %arg0, %c0_i32 : i32, i32
  }
  func.func @transform_1(%arg0: i32) -> (i32, i32) {
    %c0_i32 = arith.constant 0 : i32
    %c0_i32_0 = arith.constant 0 : i32
    %c0_i32_1 = arith.constant 0 : i32
    return %c0_i32, %c0_i32_0 : i32, i32
  }
  func.func @transform_2(%arg0: i32) -> (i32, i32) {
    %c0_i32 = arith.constant 0 : i32
    %c0_i32_0 = arith.constant 0 : i32
    %c0_i32_1 = arith.constant 0 : i32
    return %c0_i32, %c0_i32_0 : i32, i32
  }
  func.func @transform_3(%arg0: i32) -> (i32, i32) {
    %c0_i32 = arith.constant 0 : i32
    %c0_i32_0 = arith.constant 0 : i32
    %c0_i32_1 = arith.constant 0 : i32
    return %c0_i32, %c0_i32_0 : i32, i32
  }
  func.func @transform_4(%arg0: i32) -> (i32, i32) {
    %c0_i32 = arith.constant 0 : i32
    %c0_i32_0 = arith.constant 0 : i32
    %c0_i32_1 = arith.constant 0 : i32
    return %c0_i32, %c0_i32_0 : i32, i32
  }
  func.func @transform_5(%arg0: i32) -> (i32, i32) {
    %c0_i32 = arith.constant 0 : i32
    %c0_i32_0 = arith.constant 0 : i32
    %c0_i32_1 = arith.constant 0 : i32
    return %c0_i32, %c0_i32_0 : i32, i32
  }
  func.func @transform_6(%arg0: i32) -> (i32, i32) {
    %c0_i32 = arith.constant 0 : i32
    %c0_i32_0 = arith.constant 0 : i32
    %c0_i32_1 = arith.constant 0 : i32
    return %c0_i32, %c0_i32_0 : i32, i32
  }
  func.func @transform_7(%arg0: i32) -> (i32, i32) {
    %c0_i32 = arith.constant 0 : i32
    %c0_i32_0 = arith.constant 0 : i32
    return %arg0, %c0_i32 : i32, i32
  }
}

</mosaic_0001>

<bundles_post_ra>
// kernel: tpu_custom_call.1
= control target key start
LH: loop header
LB: loop body
LE: loop exit
PB: predicated region body
PF: predicated region fallthrough
CT: control target
= control target key end

     0   :  { %12 = vsyncpa [#allocation3], 0  ;;  %s858_s0 = inlined_call_operand.hbm [shape: bf16[16,128], index: 0, kind: input, shape index: {}]   ;;  %s859_s1 = inlined_call_operand.hbm [shape: bf16[128,128], index: 1, kind: input, shape index: {}]   ;;  %s860_s2 = inlined_call_operand.vmem [shape: f32[1,128], index: 2, kind: input, shape index: {}]   ;;  %s861_s3 = inlined_call_operand.hbm [shape: bf16[128,256], index: 3, kind: input, shape index: {}]   ;;  %s862_s4 = inlined_call_operand.vmem [shape: f32[1,256], index: 4, kind: input, shape index: {}]   ;;  %s863_s5 = inlined_call_operand.hbm [shape: bf16[128,128], index: 5, kind: input, shape index: {}]   ;;  %s864_s6 = inlined_call_operand.vmem [shape: f32[1,128], index: 6, kind: input, shape index: {}]   ;;  %s865_s7 = inlined_call_operand.hbm [shape: f32[16,128], index: 7, kind: output, shape index: {}]  }
   0x1   :  { %13 = vsyncpa [#allocation6], 0 }
   0x2   :  { %14 = vsyncpa [#allocation9], 0 }
   0x3   :  { %15 = vsyncpa [#allocation4], 0  ;;  %s747_s24 = smov [#allocation5]   ;;  %s748_s26 = smov [#allocation2]  }
   0x4   :  { %s33_s25 = sshll.u32 %s747_s24, 4  ;;  %s21_s27 = sshll.u32 %s748_s26, 4  ;;  %s34_s25 = int_to_ptr.vmem [resolvable:$true] %s33_s25  ;;  %s22_s27 = int_to_ptr.vmem [resolvable:$true] %s21_s27 }
   0x5   :  { %s647_s28 = scalar_lea.vmem %s34_s25, 1024  ;;  %p652_p1 = scmp.lt.s32.totalorder %s34_s25, %s34_s25 }
   0x6   :  { %p648_p0 = scmp.ne.s32.totalorder %s34_s25, %s647_s28  ;;  %p653_p2 = scmp.lt.s32.totalorder %s647_s28, %s647_s28 }
   0x8   :  { %p654_p3 = por %p653_p2, %p652_p1 }
   0xa   :  { %p655_p4 = pnand %p654_p3, %p648_p0 }
   0xc   :  { %658 = shalt.err (!%p655_p4)
}
   0xd   :  { %s749_s29 = smov 64   ;;  %s750_s30 = smov 4  }
   0xe   :  { %39 = dma.hbm_to_vmem [thread:$0]  %s859_s1, 1024, %s34_s25, [#allocation6], %s749_s29, %s749_s29, %s750_s30  }
   0xf   :  { %s667_s10 = scalar_lea.vmem %s22_s27, 128  ;;  %p672_p6 = scmp.lt.s32.totalorder %s22_s27, %s22_s27 }
  0x10   :  { %p668_p5 = scmp.ne.s32.totalorder %s22_s27, %s667_s10  ;;  %p673_p7 = scmp.lt.s32.totalorder %s667_s10, %s667_s10 }
  0x12   :  { %p674_p8 = por %p673_p7, %p672_p6 }
  0x14   :  { %p675_p9 = pnand %p674_p8, %p668_p5 }
  0x16   :  { %678 = shalt.err (!%p675_p9)
}
  0x17   :  { %27 = dma.hbm_to_vmem [thread:$0]  %s858_s0, 128, %s22_s27, [#allocation3], %s749_s29, %s749_s29, %s750_s30  }
  0x18   :  { %s751_s13 = smov [#allocation7]  }
  0x19   :  { %s47_s14 = sshll.u32 %s751_s13, 4  ;;  %s48_s14 = int_to_ptr.vmem [resolvable:$true] %s47_s14 }
  0x1a   :  { %s687_s15 = scalar_lea.vmem %s48_s14, 2048  ;;  %p692_p11 = scmp.lt.s32.totalorder %s48_s14, %s48_s14 }
  0x1b   :  { %p688_p10 = scmp.ne.s32.totalorder %s48_s14, %s687_s15  ;;  %p693_p12 = scmp.lt.s32.totalorder %s687_s15, %s687_s15 }
  0x1d   :  { %p694_p13 = por %p693_p12, %p692_p11 }
  0x1f   :  { %p695_p0 = pnand %p694_p13, %p688_p10 }
  0x21   :  { %698 = shalt.err (!%p695_p0)
}
  0x22   :  { %s752_s1 = smov 128   ;;  %s753_s16 = smov 8  }
  0x23   :  { %53 = dma.hbm_to_vmem [thread:$0]  %s861_s3, 2048, %s48_s14, [#allocation6], %s752_s1, %s752_s1, %s753_s16  }
  0x24   :  { %s754_s0 = smov [#allocation8]  }
  0x25   :  { %s61_s19 = sshll.u32 %s754_s0, 4  ;;  %s62_s19 = int_to_ptr.vmem [resolvable:$true] %s61_s19 }
  0x26   :  { %s707_s20 = scalar_lea.vmem %s62_s19, 1024  ;;  %p712_p2 = scmp.lt.s32.totalorder %s62_s19, %s62_s19 }
  0x27   :  { %p708_p1 = scmp.ne.s32.totalorder %s62_s19, %s707_s20  ;;  %p713_p3 = scmp.lt.s32.totalorder %s707_s20, %s707_s20 }
  0x29   :  { %p714_p4 = por %p713_p3, %p712_p2 }
  0x2b   :  { %p715_p5 = pnand %p714_p4, %p708_p1 }
  0x2d   :  { %718 = shalt.err (!%p715_p5)
}
  0x2e   :  { %67 = dma.hbm_to_vmem [thread:$0]  %s863_s5, 1024, %s62_s19, [#allocation9], %s749_s29, %s749_s29, %s750_s30  }
  0x2f   :  { %739 = dma.done.wait [#allocation3], 128  }
  0x30   :  { %740 = vsyncadd [#allocation3], 4294967168 }
  0x31   :  { %741 = dma.done.wait [#allocation6], 3072  }
  0x32   :  { %742 = vsyncadd [#allocation6], 4294964224 }
  0x33   :  { %743 = dma.done.wait [#allocation9], 1024  }
  0x34   :  { %744 = vsyncadd [#allocation9], 4294966272  ;;  %v755_v0 = vmov 0.0   ;;  %vm756_vm0 = vmmov 0   ;;  %v598_v1 = vld [vmem:[#allocation5 + $0x38] sm:$0xff]   ;;  %v599_v2 = vld [vmem:[#allocation5 + $0x30] sm:$0xff]   ;;  %v224_v45 = vlaneseq }
  0x35   :  { %546 = vmatprep.subr.bf16.mxu0 %v755_v0  ;;  %562 = vmatprep.mubr.msk.bf16.mxu0 %vm756_vm0, %v755_v0  ;;  %v600_v3 = vld [vmem:[#allocation5 + $0x28] sm:$0xff]   ;;  %v601_v4 = vld [vmem:[#allocation5 + $0x20] sm:$0xff]   ;;  %v607_v5 = vld [vmem:[#allocation7 + $0x74] ss:$8 sps:$4 sm:$0xff]   ;;  %v757_v26 = vmov 0  }
  0x36   :  { %547 = vmatpush3.bf16.msra.mxu0 %v598_v1  ;;  %v609_v6 = vld [vmem:[#allocation7 + $0x70] ss:$8 sps:$4 sm:$0xff]   ;;  %314 = vmatprep.subr.bf16.mxu1 %v607_v5  ;;  %v610_v7 = vld [vmem:[#allocation7 + $0x64] ss:$8 sps:$4 sm:$0xff]   ;;  %v612_v8 = vld [vmem:[#allocation7 + $0x60] ss:$8 sps:$4 sm:$0xff]  }
  0x37   :  { %548 = vmatprep.subr.bf16.mxu0 %v755_v0  ;;  %315 = vmatpush1.bf16.msra.mxu1 %v609_v6  ;;  %v613_v9 = vld [vmem:[#allocation7 + $0x54] ss:$8 sps:$4 sm:$0xff]   ;;  %v615_v12 = vld [vmem:[#allocation7 + $0x50] ss:$8 sps:$4 sm:$0xff]   ;;  %v616_v13 = vld [vmem:[#allocation7 + $0x44] ss:$8 sps:$4 sm:$0xff]  }
  0x38   :  { %316 = vmatprep.subr.bf16.mxu1 %v610_v7  ;;  %v602_v10 = vld [vmem:[#allocation5 + $0x18] sm:$0xff]   ;;  %v603_v11 = vld [vmem:[#allocation5 + $0x10] sm:$0xff]   ;;  %v618_v14 = vld [vmem:[#allocation7 + $0x40] ss:$8 sps:$4 sm:$0xff]   ;;  %346 = vmatprep.mubr.bf16.mxu1 %v757_v26  ;;  %v225_v46 = vshrl.u32 %v224_v45, 7 }
  0x39   :  { %v619_v15 = vld [vmem:[#allocation7 + $0x34] ss:$8 sps:$4 sm:$0xff]   ;;  %v604_v16 = vld [vmem:[#allocation5 + $0x8] sm:$0xff]   ;;  %v621_v17 = vld [vmem:[#allocation7 + $0x30] ss:$8 sps:$4 sm:$0xff]  }
  0x3a   :  { %549 = vmatpush3.bf16.msra.mxu0 %v599_v2  ;;  %v622_v18 = vld [vmem:[#allocation7 + $0x24] ss:$8 sps:$4 sm:$0xff]   ;;  %v606_v20 = vld [vmem:[#allocation2] sm:$0xff]   ;;  %v624_v21 = vld [vmem:[#allocation7 + $0x20] ss:$8 sps:$4 sm:$0xff]   ;;  %v230_v47 = vsub.s32 1, %v225_v46 }
  0x3b   :  { %550 = vmatprep.subr.bf16.mxu0 %v755_v0  ;;  %317 = vmatpush1.bf16.msra.mxu1 %v612_v8  ;;  %v605_v19 = vld [vmem:[#allocation5] sm:$0xff]   ;;  %v625_v22 = vld [vmem:[#allocation7 + $0x14] ss:$8 sps:$4 sm:$0xff]   ;;  %v627_v23 = vld [vmem:[#allocation7 + $0x10] ss:$8 sps:$4 sm:$0xff]   ;;  %v226_v57 = vsub.s32 0, %v225_v46 }
  0x3c   :  { %318 = vmatprep.subr.bf16.mxu1 %v613_v9  ;;  %v628_v24 = vld [vmem:[#allocation7 + $0x4] ss:$8 sps:$4 sm:$0xff]   ;;  %v630_v25 = vld [vmem:[#allocation7] ss:$8 sps:$4 sm:$0xff]   ;;  %v631_v27 = vld [vmem:[#allocation8 + $0x38] sm:$0xff]  }
  0x3d   :  { %v632_v28 = vld [vmem:[#allocation8 + $0x30] sm:$0xff]   ;;  %v633_v29 = vld [vmem:[#allocation8 + $0x28] sm:$0xff]   ;;  %v634_v30 = vld [vmem:[#allocation8 + $0x20] sm:$0xff]  }
  0x3e   :  { %551 = vmatpush3.bf16.msra.mxu0 %v600_v3  ;;  %v635_v31 = vld [vmem:[#allocation8 + $0x18] sm:$0xff]   ;;  %v636_v42 = vld [vmem:[#allocation8 + $0x10] sm:$0xff]   ;;  %v637_v43 = vld [vmem:[#allocation8 + $0x8] sm:$0xff]  }
  0x3f   :  { %552 = vmatprep.subr.bf16.mxu0 %v755_v0  ;;  %319 = vmatpush1.bf16.msra.mxu1 %v615_v12  ;;  %v493_v32 = vld [vmem:[%s860_s2] ss:$0 sm:$0xff]  ;;  %v638_v44 = vld [vmem:[#allocation8] sm:$0xff]  }
  0x40   :  { %320 = vmatprep.subr.bf16.mxu1 %v616_v13  ;;  %v222_v49 = vld [vmem:[%s862_s4] sm:$0x3]  ;;  %s758_s4 = smov [#allocation10]  }
  0x41   :  { %v231_v51 = vrot.slane %v222_v49, %v230_v47  ;;  %v227_v58 = vrot.slane %v222_v49, %v226_v57  ;;  %v519_v59 = vld [vmem:[%s864_s6] ss:$0 sm:$0xff]  ;;  %s479_s26 = sshll.u32 %s758_s4, 4  ;;  %s480_s26 = int_to_ptr.vmem [resolvable:$true] %s479_s26 }
  0x42   :  { %553 = vmatpush3.bf16.msra.mxu0 %v601_v4  ;;  %s719_s27 = scalar_lea.vmem %s480_s26, 256  ;;  %p724_p7 = scmp.lt.s32.totalorder %s480_s26, %s480_s26 }
  0x43   :  { %554 = vmatprep.subr.bf16.mxu0 %v755_v0  ;;  %321 = vmatpush1.bf16.msra.mxu1 %v618_v14  ;;  %p720_p6 = scmp.ne.s32.totalorder %s480_s26, %s719_s27  ;;  %p725_p8 = scmp.lt.s32.totalorder %s719_s27, %s719_s27 }
  0x44   :  { %322 = vmatprep.subr.bf16.mxu1 %v619_v15 }
  0x45   :  { %p726_p9 = por %p725_p8, %p724_p7 }
  0x46   :  { %555 = vmatpush3.bf16.msra.mxu0 %v602_v10 }
  0x47   :  { %556 = vmatprep.subr.bf16.mxu0 %v755_v0  ;;  %323 = vmatpush1.bf16.msra.mxu1 %v621_v17  ;;  %p727_p10 = pnand %p726_p9, %p720_p6 }
  0x48   :  { %324 = vmatprep.subr.bf16.mxu1 %v622_v18 }
  0x4a   :  { %557 = vmatpush3.bf16.msra.mxu0 %v603_v11 }
  0x4b   :  { %558 = vmatprep.subr.bf16.mxu0 %v755_v0  ;;  %325 = vmatpush1.bf16.msra.mxu1 %v624_v21 }
  0x4c   :  { %326 = vmatprep.subr.bf16.mxu1 %v625_v22 }
  0x4e   :  { %559 = vmatpush3.bf16.msra.mxu0 %v604_v16 }
  0x4f   :  { %560 = vmatprep.subr.bf16.mxu0 %v755_v0  ;;  %327 = vmatpush1.bf16.msra.mxu1 %v627_v23 }
  0x50   :  { %328 = vmatprep.subr.bf16.mxu1 %v628_v24 }
  0x52   :  { %561 = vmatpush3.bf16.msra.mxu0 %v605_v19 }
  0x53   :  { %566 = vmatprep.subr.bf16.mxu0 %v755_v0  ;;  %329 = vmatpush1.bf16.msra.mxu1 %v630_v25 }
  0x55   :  { %563 = vmatmul.mubr.bf16.vlgmr.msra.gmra.mxu0 %v606_v20 }
  0x56   :  { %582 = vmatprep.mubr.msk.bf16.mxu0 %vm756_vm0, %v755_v0  ;;  %567 = vmatpush3.bf16.msra.mxu0 %v631_v27 }
  0x57   :  { %568 = vmatprep.subr.bf16.mxu0 %v755_v0 }
  0x5a   :  { %569 = vmatpush3.bf16.msra.mxu0 %v632_v28 }
  0x5b   :  { %570 = vmatprep.subr.bf16.mxu0 %v755_v0 }
  0x5e   :  { %571 = vmatpush3.bf16.msra.mxu0 %v633_v29 }
  0x5f   :  { %572 = vmatprep.subr.bf16.mxu0 %v755_v0 }
  0x62   :  { %573 = vmatpush3.bf16.msra.mxu0 %v634_v30 }
  0x63   :  { %574 = vmatprep.subr.bf16.mxu0 %v755_v0 }
  0x66   :  { %575 = vmatpush3.bf16.msra.mxu0 %v635_v31 }
  0x67   :  { %576 = vmatprep.subr.bf16.mxu0 %v755_v0 }
  0x6a   :  { %577 = vmatpush3.bf16.msra.mxu0 %v636_v42 }
  0x6b   :  { %578 = vmatprep.subr.bf16.mxu0 %v755_v0 }
  0x6e   :  { %579 = vmatpush3.bf16.msra.mxu0 %v637_v43 }
  0x6f   :  { %580 = vmatprep.subr.bf16.mxu0 %v755_v0 }
  0x72   :  { %581 = vmatpush3.bf16.msra.mxu0 %v638_v44 }
 0x115   :  { %v196_v33 = vpop.f32.mrf.mxu0 }
 0x116   :  { %v197_v35 = vadd.f32 %v493_v32, %v196_v33 }
 0x117   :  { %v564_v34 = vpop.f32.mrf.mxu0 }
 0x118   :  { %v203_v39 = vmax.f32 %v197_v35, 0.0 }
 0x119   :  { %v199_v36 = vpop.f32.mrf.mxu0 }
 0x11a   :  { %v200_v37 = vadd.f32 %v493_v32, %v199_v36 }
 0x11b   :  { %v565_v38 = vpop.f32.mrf.mxu0 }
 0x11c   :  { %v204_v40 = vmax.f32 %v200_v37, 0.0 }
 0x11e   :  { %v205_v41 = vpack.c.bf16 %v204_v40, %v203_v39 }
 0x120   :  { %347 = vmatmul.mubr.bf16.vlgmr.msra.gmra.mxu1 %v205_v41 }
 0x1e0   :  { %v348_v48 = vpop.f32.mrf.mxu1 }
 0x1e1   :  { %v349_v61 = vadd.f32 %v348_v48, %v227_v58 }
 0x1e2   :  { %v350_v50 = vpop.f32.mrf.mxu1 }
 0x1e3   :  { %v351_v54 = vadd.f32 %v350_v50, %v231_v51 }
 0x1e4   :  { %v352_v52 = vpop.f32.mrf.mxu1 }
 0x1e5   :  { %v353_v2 = vadd.f32 %v352_v52, %v227_v58 }
 0x1e6   :  { %v354_v53 = vpop.f32.mrf.mxu1 }
 0x1e7   :  { %v355_v55 = vadd.f32 %v354_v53, %v231_v51 }
 0x1e9   :  { %v357_v56 = vpack.c.bf16 %v355_v55, %v351_v54 }
 0x1eb   :  { %583 = vmatmul.mubr.bf16.vlgmr.msra.gmra.mxu0 %v357_v56 }
 0x2ab   :  { %v463_v60 = vpop.f32.mrf.mxu0 }
 0x2ac   :  { %v464_v62 = vadd.f32 %v519_v59, %v463_v60 }
 0x2ad   :  { %v584_v63 = vpop.f32.mrf.mxu0 }
 0x2ae   :  { %v470_v0 = vadd.f32 %v464_v62, %v349_v61 }
 0x2af   :  { %v466_v1 = vpop.f32.mrf.mxu0 }
 0x2b0   :  { %472 = vst [vmem:[#allocation10] sm:$0xff] %v470_v0  ;;  %v467_v3 = vadd.f32 %v519_v59, %v466_v1 }
 0x2b1   :  { %v585_v4 = vpop.f32.mrf.mxu0 }
 0x2b2   :  { %v471_v5 = vadd.f32 %v467_v3, %v353_v2 }
 0x2b4   :  { %473 = vst [vmem:[#allocation10 + $0x8] sm:$0xff] %v471_v5 }
 0x2b5   :  { %730 = shalt.err (!%p727_p10)
}
 0x2b6   :  { %485 = dma.vmem_to_hbm [thread:$0]  %s480_s26, 256, %s865_s7, [#allocation4], %s752_s1, %s752_s1, %s753_s16  }
 0x2b7   :  { %745 = dma.done.wait [#allocation4], 256  }
 0x2b8   :  { %746 = vsyncadd [#allocation4], 4294967040 }
 0x2b9   :  { %489 = vsyncpa [#allocation3], 1 }
 0x2ba   :  { %490 = vsyncpa [#allocation6], 1 }
 0x2bb   :  { %491 = vsyncpa [#allocation9], 1 }
 0x2bc   :  { %492 = vsyncpa [#allocation4], 1 }

</bundles_post_ra>
